<compile_context>
chip_gen: v7x
topology: tpu7x:2x2x1
jax: 0.10.0
libtpu: 0.0.40
codegen_flags: <defaults>
</compile_context>

<pallas_src>
import math

import jax
import jax.numpy as jnp
from jax.experimental import pallas as pl
from jax.experimental.pallas import tpu as pltpu


def _multi_dot_kernel(q_ref, k_ref, wq_ref, bq_ref, wk_ref, bk_ref, wv_ref, bv_ref,
                      pe_ref, ctx_ref):
    # Block shapes inside the kernel (BB = batch block):
    #   q_ref:  (BB, H)        k_ref:  (BB, Tx, 2H)
    #   wq_ref: (H, H)         bq_ref: (1, H)
    #   wk_ref: (2H, H)        bk_ref: (1, H)
    #   wv_ref: (2H, 2H)       bv_ref: (1, 2H)
    #   pe_ref: (H, 2H)  fused pool@expand indicator, entries 1/sqrt(hs)
    #   ctx_ref: (BB, 2H)
    BB, Tx, H2 = k_ref.shape
    H = q_ref.shape[-1]

    q = q_ref[...]                                  # (BB, H), possibly bf16
    kf = k_ref[...].reshape(BB * Tx, H2)            # (BB*Tx, 2H), possibly bf16

    # Fused per-head projections (all heads at once), f32 accumulation on the MXU.
    mod_q = jnp.dot(q, wq_ref[...], preferred_element_type=jnp.float32) + bq_ref[...]   # (BB, H)
    mod_k = jnp.dot(kf, wk_ref[...], preferred_element_type=jnp.float32) + bk_ref[...]  # (BB*Tx, H)
    mod_v = jnp.dot(kf, wv_ref[...], preferred_element_type=jnp.float32) + bv_ref[...]  # (BB*Tx, 2H)

    # Per-head scores, produced directly in the expanded layout: lane j of `scores`
    # holds the score of head j // (2*hs), already scaled by 1/sqrt(hs) via pe.
    prod = mod_k.reshape(BB, Tx, H) * mod_q.reshape(BB, 1, H)                  # (BB, Tx, H) f32
    scores = jnp.dot(prod.reshape(BB * Tx, H), pe_ref[...],
                     preferred_element_type=jnp.float32).reshape(BB, Tx, H2)   # (BB, Tx, 2H)

    # NOTE: the PyTorch reference calls scores.masked_fill(enc_mask, -inf) WITHOUT
    # assigning the result (out-of-place, return value dropped), so the padding mask
    # has no effect on the output. We intentionally match that exactly.

    # Numerically-stable, fully lane-dense softmax over Tx (f32).
    m = jnp.max(scores, axis=1, keepdims=True)
    e = jnp.exp(scores - m)
    w = e / jnp.sum(e, axis=1, keepdims=True)                                  # (BB, Tx, 2H)

    # Contract over Tx: ctx[b, j] = sum_t w[b, t, j] * mod_v[b, t, j]
    ctx = jnp.sum(w * mod_v.reshape(BB, Tx, H2), axis=1)                       # (BB, 2H)
    ctx_ref[...] = ctx.astype(ctx_ref.dtype)


# Budget for the per-step working set; fits under v7x's 64 MiB/TC with headroom and
# is raised above v5e's 16 MiB default scoped limit via vmem_limit_bytes below.
_VMEM_BUDGET_BYTES = 48 << 20


def _pick_batch_block(batch, tx, hidden, *, key_bytes=4,
                      vmem_budget_bytes=_VMEM_BUDGET_BYTES):
    """VMEM-budgeted batch block.

    Prefers BB == batch (single grid step: extra steps only add ~0.35us overhead and
    shrink the MXU M-dim). If the whole batch does not fit the budget, picks the
    largest multiple-of-8 divisor of `batch` (keeps the 2D query/ctx blocks
    sublane-dense and legal), falling back to the largest divisor otherwise.
    """
    h2 = 2 * hidden
    # Per batch row: keys block (double-buffered) + the f32 intermediates that
    # coexist (mod_k, mod_v, prod, scores, exp/weights, weighted values).
    per_row = tx * h2 * key_bytes * 2 + tx * (2 * hidden + 4 * h2) * 4
    cap = max(1, vmem_budget_bytes // max(per_row, 1))
    if batch <= cap:
        return batch
    d = (min(cap, batch) // 8) * 8
    while d >= 8:
        if batch % d == 0:
            return d
        d -= 8
    # TODO(synk): pad the batch to a multiple of 8 instead of degrading to a tiny BB.
    return max(d for d in range(1, min(cap, batch) + 1) if batch % d == 0)


def multi_dot(query, keys, params, *, num_heads, batch_block=None, matmul_dtype=None):
    """query: (B,1,H), keys: (B,Tx,2H) -> (context (B,1,2H) f32, None) like MultiDot.

    matmul_dtype: dtype for the MXU matmul inputs (query/keys/stacked weights).
      Default f32 (exact, safe on v5e). Pass jnp.bfloat16 on v6e/v7x for full-rate
      MXU and halved keys HBM traffic; accumulation / softmax stay f32.
    """
    B, _, H = query.shape
    Tx, H2 = keys.shape[1], keys.shape[2]
    nH = num_heads
    hs = H // nH

    f32 = jnp.float32
    mm = jnp.dtype(matmul_dtype) if matmul_dtype is not None else jnp.dtype(f32)

    key_bytes = jnp.dtype(mm).itemsize
    BB = batch_block if batch_block is not None else _pick_batch_block(
        B, Tx, H, key_bytes=key_bytes)
    assert B % BB == 0, (B, BB)

    # Stack per-head nn.Linear weights; pre-transpose to (in, out) row-major.
    wqT = jnp.concatenate([w.T for w in params["Wq_w"]], axis=1).astype(mm)    # (H, H)
    bq = jnp.concatenate(params["Wq_b"]).reshape(1, H).astype(f32)
    wkT = jnp.concatenate([w.T for w in params["Wk_w"]], axis=1).astype(mm)    # (2H, H)
    bk = jnp.concatenate(params["Wk_b"]).reshape(1, H).astype(f32)
    wvT = jnp.concatenate([w.T for w in params["Wv_w"]], axis=1).astype(mm)    # (2H, 2H)
    bv = jnp.concatenate(params["Wv_b"]).reshape(1, H2).astype(f32)

    # Fused pool@expand: pe[i, j] = 1/sqrt(hs) if lane i belongs to the same head as
    # value lane j, else 0. Kept in f32 so the score accumulation stays exact.
    pe = ((jnp.arange(H)[:, None] // hs) ==
          (jnp.arange(H2)[None, :] // (2 * hs))).astype(f32) * (1.0 / math.sqrt(hs))

    q2d = query.reshape(B, H).astype(mm)     # free reshape in the wrapper
    keys_in = keys.astype(mm)

    ctx2d = pl.pallas_call(
        _multi_dot_kernel,
        out_shape=jax.ShapeDtypeStruct((B, H2), jnp.float32),
        grid=(B // BB,),
        in_specs=[
            pl.BlockSpec((BB, H), lambda i: (i, 0)),           # query block (2D, sublane-dense)
            pl.BlockSpec((BB, Tx, H2), lambda i: (i, 0, 0)),   # keys block
            pl.BlockSpec((H, H), lambda i: (0, 0)),            # Wq^T   (resident)
            pl.BlockSpec((1, H), lambda i: (0, 0)),            # Wq bias
            pl.BlockSpec((H2, H), lambda i: (0, 0)),           # Wk^T
            pl.BlockSpec((1, H), lambda i: (0, 0)),            # Wk bias
            pl.BlockSpec((H2, H2), lambda i: (0, 0)),          # Wv^T
            pl.BlockSpec((1, H2), lambda i: (0, 0)),           # Wv bias
            pl.BlockSpec((H, H2), lambda i: (0, 0)),           # fused pool@expand (scaled)
        ],
        out_specs=pl.BlockSpec((BB, H2), lambda i: (i, 0)),    # lane/sublane-dense context
        compiler_params=pltpu.CompilerParams(
            dimension_semantics=("parallel",),
            vmem_limit_bytes=64 << 20,
        ),
    )(q2d, keys_in, wqT, bq, wkT, bk, wvT, bv, pe)

    return ctx2d.reshape(B, 1, H2), None   # MultiDot.forward returns weights=None


def _reference(query, keys, params, *, num_heads):
    # Pure-JAX mirror of the PyTorch MultiDot forward (masked_fill is a no-op there).
    H = query.shape[-1]
    hs = H // num_heads
    ctxs = []
    for h in range(num_heads):
        mod_k = keys @ params["Wk_w"][h].T + params["Wk_b"][h]
        mod_q = query @ params["Wq_w"][h].T + params["Wq_b"][h]
        mod_v = keys @ params["Wv_w"][h].T + params["Wv_b"][h]
        scores = (mod_q @ jnp.swapaxes(mod_k, 1, 2)) / math.sqrt(hs)
        weights = jax.nn.softmax(scores, axis=-1)
        ctxs.append(weights @ mod_v)
    return jnp.concatenate(ctxs, axis=-1), None


if __name__ == "__main__":
    B, Tx, H, nH = 2, 8, 32, 4       # hidden_size=32, num_heads=4 -> head_size=8
    hs = H // nH

    key = jax.random.PRNGKey(0)
    kq, kk, *wkeys = jax.random.split(key, 2 + 6 * nH)

    def mk(k, shape):
        return 0.1 * jax.random.normal(k, shape, jnp.float32)

    params = {"Wq_w": [], "Wq_b": [], "Wk_w": [], "Wk_b": [], "Wv_w": [], "Wv_b": []}
    it = iter(wkeys)
    for _ in range(nH):
        params["Wq_w"].append(mk(next(it), (hs, H)))          # (out, in) like nn.Linear
        params["Wq_b"].append(mk(next(it), (hs,)))
        params["Wk_w"].append(mk(next(it), (hs, 2 * H)))
        params["Wk_b"].append(mk(next(it), (hs,)))
        params["Wv_w"].append(mk(next(it), (2 * hs, 2 * H)))
        params["Wv_b"].append(mk(next(it), (2 * hs,)))

    query = jax.random.normal(kq, (B, 1, H), jnp.float32)
    keys = jax.random.normal(kk, (B, Tx, 2 * H), jnp.float32)
    # zero one timestep (exercises the all-zero-key path; mask is a no-op as in PyTorch)
    keys = keys.at[0, 3, :].set(0.0)

    ctx_ref, _ = _reference(query, keys, params, num_heads=nH)

    # Exact (f32-MXU) path: must match the reference tightly.
    ctx, weights = multi_dot(query, keys, params, num_heads=nH)
    jax.block_until_ready(ctx)
    assert ctx.shape == (B, 1, 2 * H)
    assert weights is None
    assert jnp.allclose(ctx, ctx_ref, atol=1e-4, rtol=1e-4), \
        float(jnp.max(jnp.abs(ctx - ctx_ref)))

    # bf16-MXU perf path (v6e/v7x): f32 accumulation, so only looser tolerance needed.
    ctx_bf16, _ = multi_dot(query, keys, params, num_heads=nH,
                            matmul_dtype=jnp.bfloat16)
    jax.block_until_ready(ctx_bf16)
    assert ctx_bf16.shape == (B, 1, 2 * H)
    assert bool(jnp.all(jnp.isfinite(ctx_bf16)))
    assert jnp.allclose(ctx_bf16, ctx_ref, atol=1e-1, rtol=1e-1)

    print("KERNEL_OK")
</pallas_src>

<mosaic_0001>
module attributes {stable_mosaic.version = 11 : i64} {
  func.func @_multi_dot_kernel(%arg0: i32, %arg1: memref<2x32xf32, #tpu.memory_space<vmem>>, %arg2: memref<2x8x64xf32, #tpu.memory_space<vmem>>, %arg3: memref<32x32xf32, #tpu.memory_space<vmem>>, %arg4: memref<1x32xf32, #tpu.memory_space<vmem>>, %arg5: memref<64x32xf32, #tpu.memory_space<vmem>>, %arg6: memref<1x32xf32, #tpu.memory_space<vmem>>, %arg7: memref<64x64xf32, #tpu.memory_space<vmem>>, %arg8: memref<1x64xf32, #tpu.memory_space<vmem>>, %arg9: memref<32x64xf32, #tpu.memory_space<vmem>>, %arg10: memref<2x64xf32, #tpu.memory_space<vmem>>) attributes {dimension_semantics = [#tpu.dimension_semantics<parallel>], iteration_bounds = array<i64: 1>, scalar_prefetch = 0 : i64, scratch_operands = 0 : i64, tpu.core_type = #tpu.core_type<tc>, window_params = [{transform_indices = @transform_0, window_bounds = array<i64: 2, 32>}, {transform_indices = @transform_1, window_bounds = array<i64: 2, 8, 64>}, {pipeline_mode = #tpu.pipeline_mode<synchronous>, transform_indices = @transform_2, window_bounds = array<i64: 32, 32>}, {pipeline_mode = #tpu.pipeline_mode<synchronous>, transform_indices = @transform_3, window_bounds = array<i64: 1, 32>}, {pipeline_mode = #tpu.pipeline_mode<synchronous>, transform_indices = @transform_4, window_bounds = array<i64: 64, 32>}, {pipeline_mode = #tpu.pipeline_mode<synchronous>, transform_indices = @transform_5, window_bounds = array<i64: 1, 32>}, {pipeline_mode = #tpu.pipeline_mode<synchronous>, transform_indices = @transform_6, window_bounds = array<i64: 64, 64>}, {pipeline_mode = #tpu.pipeline_mode<synchronous>, transform_indices = @transform_7, window_bounds = array<i64: 1, 64>}, {pipeline_mode = #tpu.pipeline_mode<synchronous>, transform_indices = @transform_8, window_bounds = array<i64: 32, 64>}, {transform_indices = @transform_9, window_bounds = array<i64: 2, 64>}]} {
    %c0 = arith.constant 0 : index
    %c0_0 = arith.constant 0 : index
    %0 = vector.load %arg1[%c0, %c0_0] : memref<2x32xf32, #tpu.memory_space<vmem>>, vector<2x32xf32>
    %c0_1 = arith.constant 0 : index
    %c0_2 = arith.constant 0 : index
    %c0_3 = arith.constant 0 : index
    %1 = vector.load %arg2[%c0_1, %c0_2, %c0_3] : memref<2x8x64xf32, #tpu.memory_space<vmem>>, vector<2x8x64xf32>
    %2 = vector.shape_cast %1 : vector<2x8x64xf32> to vector<16x64xf32>
    %c0_4 = arith.constant 0 : index
    %c0_5 = arith.constant 0 : index
    %3 = vector.load %arg3[%c0_4, %c0_5] : memref<32x32xf32, #tpu.memory_space<vmem>>, vector<32x32xf32>
    %cst = arith.constant dense<0.000000e+00> : vector<2x32xf32>
    %4 = tpu.matmul %0, %3, %cst {dimension_numbers = #tpu.dot_dimension_numbers<[1], [0], [0], [1], [0, 0, 1, 1], [], []>} : vector<2x32xf32>, vector<32x32xf32>, vector<2x32xf32> -> vector<2x32xf32>
    %c0_6 = arith.constant 0 : index
    %c0_7 = arith.constant 0 : index
    %5 = vector.load %arg4[%c0_6, %c0_7] : memref<1x32xf32, #tpu.memory_space<vmem>>, vector<1x32xf32>
    %6 = vector.broadcast %5 : vector<1x32xf32> to vector<2x32xf32>
    %7 = arith.addf %4, %6 : vector<2x32xf32>
    %c0_8 = arith.constant 0 : index
    %c0_9 = arith.constant 0 : index
    %8 = vector.load %arg5[%c0_8, %c0_9] : memref<64x32xf32, #tpu.memory_space<vmem>>, vector<64x32xf32>
    %cst_10 = arith.constant dense<0.000000e+00> : vector<16x32xf32>
    %9 = tpu.matmul %2, %8, %cst_10 {dimension_numbers = #tpu.dot_dimension_numbers<[1], [0], [0], [1], [0, 0, 1, 1], [], []>} : vector<16x64xf32>, vector<64x32xf32>, vector<16x32xf32> -> vector<16x32xf32>
    %c0_11 = arith.constant 0 : index
    %c0_12 = arith.constant 0 : index
    %10 = vector.load %arg6[%c0_11, %c0_12] : memref<1x32xf32, #tpu.memory_space<vmem>>, vector<1x32xf32>
    %11 = vector.broadcast %10 : vector<1x32xf32> to vector<16x32xf32>
    %12 = arith.addf %9, %11 : vector<16x32xf32>
    %c0_13 = arith.constant 0 : index
    %c0_14 = arith.constant 0 : index
    %13 = vector.load %arg7[%c0_13, %c0_14] : memref<64x64xf32, #tpu.memory_space<vmem>>, vector<64x64xf32>
    %cst_15 = arith.constant dense<0.000000e+00> : vector<16x64xf32>
    %14 = tpu.matmul %2, %13, %cst_15 {dimension_numbers = #tpu.dot_dimension_numbers<[1], [0], [0], [1], [0, 0, 1, 1], [], []>} : vector<16x64xf32>, vector<64x64xf32>, vector<16x64xf32> -> vector<16x64xf32>
    %c0_16 = arith.constant 0 : index
    %c0_17 = arith.constant 0 : index
    %15 = vector.load %arg8[%c0_16, %c0_17] : memref<1x64xf32, #tpu.memory_space<vmem>>, vector<1x64xf32>
    %16 = vector.broadcast %15 : vector<1x64xf32> to vector<16x64xf32>
    %17 = arith.addf %14, %16 : vector<16x64xf32>
    %18 = vector.shape_cast %12 : vector<16x32xf32> to vector<2x8x32xf32>
    %19 = vector.shape_cast %7 : vector<2x32xf32> to vector<2x1x32xf32>
    %20 = vector.broadcast %19 : vector<2x1x32xf32> to vector<2x8x32xf32>
    %21 = arith.mulf %18, %20 : vector<2x8x32xf32>
    %22 = vector.shape_cast %21 : vector<2x8x32xf32> to vector<16x32xf32>
    %c0_18 = arith.constant 0 : index
    %c0_19 = arith.constant 0 : index
    %23 = vector.load %arg9[%c0_18, %c0_19] : memref<32x64xf32, #tpu.memory_space<vmem>>, vector<32x64xf32>
    %cst_20 = arith.constant dense<0.000000e+00> : vector<16x64xf32>
    %24 = tpu.matmul %22, %23, %cst_20 {dimension_numbers = #tpu.dot_dimension_numbers<[1], [0], [0], [1], [0, 0, 1, 1], [], []>} : vector<16x32xf32>, vector<32x64xf32>, vector<16x64xf32> -> vector<16x64xf32>
    %25 = vector.shape_cast %24 : vector<16x64xf32> to vector<2x8x64xf32>
    %cst_21 = arith.constant dense<0xFF800000> : vector<2x64xf32>
    %26 = vector.multi_reduction <maximumf>, %25, %cst_21 [1] : vector<2x8x64xf32> to vector<2x64xf32>
    %27 = vector.shape_cast %26 : vector<2x64xf32> to vector<2x1x64xf32>
    %28 = vector.broadcast %27 : vector<2x1x64xf32> to vector<2x8x64xf32>
    %29 = arith.subf %25, %28 : vector<2x8x64xf32>
    %30 = math.exp %29 : vector<2x8x64xf32>
    %cst_22 = arith.constant dense<0.000000e+00> : vector<2x64xf32>
    %31 = vector.multi_reduction <add>, %30, %cst_22 [1] : vector<2x8x64xf32> to vector<2x64xf32>
    %32 = vector.shape_cast %31 : vector<2x64xf32> to vector<2x1x64xf32>
    %33 = vector.broadcast %32 : vector<2x1x64xf32> to vector<2x8x64xf32>
    %34 = arith.divf %30, %33 : vector<2x8x64xf32>
    %35 = vector.shape_cast %17 : vector<16x64xf32> to vector<2x8x64xf32>
    %36 = arith.mulf %34, %35 : vector<2x8x64xf32>
    %cst_23 = arith.constant dense<0.000000e+00> : vector<2x64xf32>
    %37 = vector.multi_reduction <add>, %36, %cst_23 [1] : vector<2x8x64xf32> to vector<2x64xf32>
    %c0_24 = arith.constant 0 : index
    %c0_25 = arith.constant 0 : index
    %38 = vector.load %arg10[%c0_24, %c0_25] : memref<2x64xf32, #tpu.memory_space<vmem>>, vector<2x64xf32>
    tpu.vector_store %arg10[%c0_24, %c0_25], %37 {strides = array<i32>} : memref<2x64xf32, #tpu.memory_space<vmem>>, vector<2x64xf32>,
    return
  }
  func.func @transform_0(%arg0: i32) -> (i32, i32) {
    %c0_i32 = arith.constant 0 : i32
    %c0_i32_0 = arith.constant 0 : i32
    return %arg0, %c0_i32 : i32, i32
  }
  func.func @transform_1(%arg0: i32) -> (i32, i32, i32) {
    %c0_i32 = arith.constant 0 : i32
    %c0_i32_0 = arith.constant 0 : i32
    %c0_i32_1 = arith.constant 0 : i32
    return %arg0, %c0_i32, %c0_i32_0 : i32, i32, i32
  }
  func.func @transform_2(%arg0: i32) -> (i32, i32) {
    %c0_i32 = arith.constant 0 : i32
    %c0_i32_0 = arith.constant 0 : i32
    %c0_i32_1 = arith.constant 0 : i32
    return %c0_i32, %c0_i32_0 : i32, i32
  }
  func.func @transform_3(%arg0: i32) -> (i32, i32) {
    %c0_i32 = arith.constant 0 : i32
    %c0_i32_0 = arith.constant 0 : i32
    %c0_i32_1 = arith.constant 0 : i32
    return %c0_i32, %c0_i32_0 : i32, i32
  }
  func.func @transform_4(%arg0: i32) -> (i32, i32) {
    %c0_i32 = arith.constant 0 : i32
    %c0_i32_0 = arith.constant 0 : i32
    %c0_i32_1 = arith.constant 0 : i32
    return %c0_i32, %c0_i32_0 : i32, i32
  }
  func.func @transform_5(%arg0: i32) -> (i32, i32) {
    %c0_i32 = arith.constant 0 : i32
    %c0_i32_0 = arith.constant 0 : i32
    %c0_i32_1 = arith.constant 0 : i32
    return %c0_i32, %c0_i32_0 : i32, i32
  }
  func.func @transform_6(%arg0: i32) -> (i32, i32) {
    %c0_i32 = arith.constant 0 : i32
    %c0_i32_0 = arith.constant 0 : i32
    %c0_i32_1 = arith.constant 0 : i32
    return %c0_i32, %c0_i32_0 : i32, i32
  }
  func.func @transform_7(%arg0: i32) -> (i32, i32) {
    %c0_i32 = arith.constant 0 : i32
    %c0_i32_0 = arith.constant 0 : i32
    %c0_i32_1 = arith.constant 0 : i32
    return %c0_i32, %c0_i32_0 : i32, i32
  }
  func.func @transform_8(%arg0: i32) -> (i32, i32) {
    %c0_i32 = arith.constant 0 : i32
    %c0_i32_0 = arith.constant 0 : i32
    %c0_i32_1 = arith.constant 0 : i32
    return %c0_i32, %c0_i32_0 : i32, i32
  }
  func.func @transform_9(%arg0: i32) -> (i32, i32) {
    %c0_i32 = arith.constant 0 : i32
    %c0_i32_0 = arith.constant 0 : i32
    return %arg0, %c0_i32 : i32, i32
  }
}

</mosaic_0001>

<bundles_post_ra>
// kernel: tpu_custom_call.1
= control target key start
LH: loop header
LB: loop body
LE: loop exit
PB: predicated region body
PF: predicated region fallthrough
CT: control target
= control target key end

     0   :  { %14 = vsyncpa [#allocation3], 0  ;;  %s1239_s0 = inlined_call_operand.hbm [shape: f32[2,32], index: 0, kind: input, shape index: {}]   ;;  %s1240_s1 = inlined_call_operand.hbm [shape: f32[2,8,64], index: 1, kind: input, shape index: {}]   ;;  %s1241_s2 = inlined_call_operand.hbm [shape: f32[32,32], index: 2, kind: input, shape index: {}]   ;;  %s1242_s3 = inlined_call_operand.hbm [shape: f32[1,32], index: 3, kind: input, shape index: {}]   ;;  %s1243_s4 = inlined_call_operand.hbm [shape: f32[64,32], index: 4, kind: input, shape index: {}]   ;;  %s1244_s5 = inlined_call_operand.hbm [shape: f32[1,32], index: 5, kind: input, shape index: {}]   ;;  %s1245_s6 = inlined_call_operand.hbm [shape: f32[64,64], index: 6, kind: input, shape index: {}]   ;;  %s1246_s7 = inlined_call_operand.hbm [shape: f32[1,64], index: 7, kind: input, shape index: {}]   ;;  %s1247_s8 = inlined_call_operand.hbm [shape: f32[32,64], index: 8, kind: input, shape index: {}]   ;;  %s1248_s9 = inlined_call_operand.hbm [shape: f32[2,64], index: 9, kind: output, shape index: {}]  }
   0x1   :  { %15 = vsyncpa [#allocation6], 0 }
   0x2   :  { %16 = vsyncpa [#allocation9], 0 }
   0x3   :  { %17 = vsyncpa [#allocation12], 0 }
   0x4   :  { %18 = vsyncpa [#allocation15], 0 }
   0x5   :  { %19 = vsyncpa [#allocation4], 0  ;;  %s1025_s30 = smov [#allocation5]   ;;  %s793_s13 = scalar_lea.hbm %s1240_s1, 256 }
   0x6   :  { %s35_s10 = sshll.u32 %s1025_s30, 4  ;;  %p794_p0 = scmp.ne.s32.totalorder %s1240_s1, %s793_s13  ;;  %s36_s10 = int_to_ptr.vmem [resolvable:$true] %s35_s10 }
   0x7   :  { %p797_p1 = scmp.lt.u32.totalorder %s793_s13, %s1240_s1 }
   0x9   :  { %p799_p2 = pnand %p797_p1, %p794_p0 }
   0xb   :  { %802 = shalt.err (!%p799_p2)
}
   0xc   :  { %s803_s18 = scalar_lea.vmem %s36_s10, 256  ;;  %p808_p4 = scmp.lt.s32.totalorder %s36_s10, %s36_s10 }
   0xd   :  { %p804_p3 = scmp.ne.s32.totalorder %s36_s10, %s803_s18  ;;  %p809_p5 = scmp.lt.s32.totalorder %s803_s18, %s803_s18 }
   0xf   :  { %p810_p6 = por %p809_p5, %p808_p4 }
  0x11   :  { %p811_p7 = pnand %p810_p6, %p804_p3 }
  0x13   :  { %814 = shalt.err (!%p811_p7)
}
  0x14   :  { %s1026_s19 = smov 128   ;;  %s1027_s20 = smov 8  }
  0x15   :  { %41 = dma.hbm_to_vmem [thread:$0]  %s1240_s1, 256, %s36_s10, [#allocation6], %s1026_s19, %s1026_s19, %s1027_s20  }
  0x16   :  { %s1028_s23 = smov [#allocation8]   ;;  %s1029_s25 = smov [#allocation11]  }
  0x17   :  { %s60_s24 = sshll.u32 %s1028_s23, 4  ;;  %s82_s26 = sshll.u32 %s1029_s25, 4  ;;  %s61_s24 = int_to_ptr.vmem [resolvable:$true] %s60_s24  ;;  %s83_s26 = int_to_ptr.vmem [resolvable:$true] %s82_s26 }
  0x18   :  { %s815_s29 = scalar_lea.hbm %s1242_s3, 16 }
  0x19   :  { %p816_p8 = scmp.ne.s32.totalorder %s1242_s3, %s815_s29  ;;  %p819_p9 = scmp.lt.u32.totalorder %s815_s29, %s1242_s3 }
  0x1b   :  { %p821_p10 = pnand %p819_p9, %p816_p8 }
  0x1d   :  { %824 = shalt.err (!%p821_p10)
}
  0x1e   :  { %s825_s1 = scalar_lea.vmem %s61_s24, 16  ;;  %s829_s10 = scalar_lea.vmem %s61_s24, 32 }
  0x1f   :  { %p826_p11 = scmp.ne.s32.totalorder %s61_s24, %s825_s1  ;;  %p830_p12 = scmp.lt.s32.totalorder %s61_s24, %s61_s24 }
  0x20   :  { %p831_p13 = scmp.lt.s32.totalorder %s829_s10, %s825_s1 }
  0x22   :  { %p832_p0 = por %p831_p13, %p830_p12 }
  0x24   :  { %p833_p1 = pnand %p832_p0, %p826_p11 }
  0x26   :  { %836 = shalt.err (!%p833_p1)
}
  0x27   :  { %63 = dma.hbm_to_vmem [thread:$0]  %s1242_s3, 16, %s61_s24, [#allocation9]  }
  0x28   :  { %s837_s18 = scalar_lea.hbm %s1244_s5, 16 }
  0x29   :  { %p838_p2 = scmp.ne.s32.totalorder %s1244_s5, %s837_s18  ;;  %p841_p3 = scmp.lt.u32.totalorder %s837_s18, %s1244_s5 }
  0x2b   :  { %p843_p4 = pnand %p841_p3, %p838_p2 }
  0x2d   :  { %846 = shalt.err (!%p843_p4)
}
  0x2e   :  { %s847_s27 = scalar_lea.vmem %s83_s26, 16  ;;  %s851_s28 = scalar_lea.vmem %s83_s26, 32 }
  0x2f   :  { %p848_p5 = scmp.ne.s32.totalorder %s83_s26, %s847_s27  ;;  %p852_p6 = scmp.lt.s32.totalorder %s83_s26, %s83_s26 }
  0x30   :  { %p853_p7 = scmp.lt.s32.totalorder %s851_s28, %s847_s27 }
  0x32   :  { %p854_p8 = por %p853_p7, %p852_p6 }
  0x34   :  { %p855_p9 = pnand %p854_p8, %p848_p5 }
  0x36   :  { %858 = shalt.err (!%p855_p9)
}
  0x37   :  { %85 = dma.hbm_to_vmem [thread:$0]  %s1244_s5, 16, %s83_s26, [#allocation12]  }
  0x38   :  { %s1030_s29 = smov [#allocation14]   ;;  %s1031_s11 = smov [#allocation2]  }
  0x39   :  { %s104_s30 = sshll.u32 %s1030_s29, 4  ;;  %s26_s12 = sshll.u32 %s1031_s11, 4  ;;  %s105_s30 = int_to_ptr.vmem [resolvable:$true] %s104_s30  ;;  %s27_s12 = int_to_ptr.vmem [resolvable:$true] %s26_s12 }
  0x3a   :  { %s859_s10 = scalar_lea.hbm %s1246_s7, 16 }
  0x3b   :  { %p860_p10 = scmp.ne.s32.totalorder %s1246_s7, %s859_s10  ;;  %p863_p11 = scmp.lt.u32.totalorder %s859_s10, %s1246_s7 }
  0x3d   :  { %p865_p12 = pnand %p863_p11, %p860_p10 }
  0x3f   :  { %868 = shalt.err (!%p865_p12)
}
  0x40   :  { %s869_s5 = scalar_lea.vmem %s105_s30, 16  ;;  %s873_s26 = scalar_lea.vmem %s105_s30, 32 }
  0x41   :  { %p870_p13 = scmp.ne.s32.totalorder %s105_s30, %s869_s5  ;;  %p874_p0 = scmp.lt.s32.totalorder %s105_s30, %s105_s30 }
  0x42   :  { %p875_p1 = scmp.lt.s32.totalorder %s873_s26, %s869_s5 }
  0x44   :  { %p876_p2 = por %p875_p1, %p874_p0 }
  0x46   :  { %p877_p3 = pnand %p876_p2, %p870_p13 }
  0x48   :  { %880 = shalt.err (!%p877_p3)
}
  0x49   :  { %107 = dma.hbm_to_vmem [thread:$0]  %s1246_s7, 16, %s105_s30, [#allocation15]  }
  0x4a   :  { %s881_s25 = scalar_lea.hbm %s1239_s0, 32 }
  0x4b   :  { %p882_p4 = scmp.ne.s32.totalorder %s1239_s0, %s881_s25  ;;  %p885_p5 = scmp.lt.u32.totalorder %s881_s25, %s1239_s0 }
  0x4d   :  { %p887_p6 = pnand %p885_p5, %p882_p4 }
  0x4f   :  { %890 = shalt.err (!%p887_p6)
}
  0x50   :  { %s891_s29 = scalar_lea.vmem %s27_s12, 32  ;;  %p896_p8 = scmp.lt.s32.totalorder %s27_s12, %s27_s12 }
  0x51   :  { %p892_p7 = scmp.ne.s32.totalorder %s27_s12, %s891_s29  ;;  %p897_p9 = scmp.lt.s32.totalorder %s891_s29, %s891_s29 }
  0x53   :  { %p898_p10 = por %p897_p9, %p896_p8 }
  0x55   :  { %p899_p11 = pnand %p898_p10, %p892_p7 }
  0x57   :  { %902 = shalt.err (!%p899_p11)
}
  0x58   :  { %29 = dma.hbm_to_vmem [thread:$0]  %s1239_s0, 32, %s27_s12, [#allocation3]  }
  0x59   :  { %s1032_s11 = smov [#allocation7]   ;;  %s1033_s1 = smov [#allocation10]  }
  0x5a   :  { %s47_s13 = sshll.u32 %s1032_s11, 4  ;;  %s69_s10 = sshll.u32 %s1033_s1, 4  ;;  %s48_s13 = int_to_ptr.vmem [resolvable:$true] %s47_s13  ;;  %s70_s10 = int_to_ptr.vmem [resolvable:$true] %s69_s10 }
  0x5b   :  { %s903_s16 = scalar_lea.hbm %s1241_s2, 512 }
  0x5c   :  { %p904_p12 = scmp.ne.s32.totalorder %s1241_s2, %s903_s16  ;;  %p907_p13 = scmp.lt.u32.totalorder %s903_s16, %s1241_s2 }
  0x5e   :  { %p909_p0 = pnand %p907_p13, %p904_p12 }
  0x60   :  { %912 = shalt.err (!%p909_p0)
}
  0x61   :  { %s913_s0 = scalar_lea.vmem %s48_s13, 512  ;;  %p918_p2 = scmp.lt.s32.totalorder %s48_s13, %s48_s13 }
  0x62   :  { %p914_p1 = scmp.ne.s32.totalorder %s48_s13, %s913_s0  ;;  %p919_p3 = scmp.lt.s32.totalorder %s913_s0, %s913_s0 }
  0x64   :  { %p920_p4 = por %p919_p3, %p918_p2 }
  0x66   :  { %p921_p5 = pnand %p920_p4, %p914_p1 }
  0x68   :  { %924 = shalt.err (!%p921_p5)
}
  0x69   :  { %53 = dma.hbm_to_vmem [thread:$0]  %s1241_s2, 512, %s48_s13, [#allocation6], %s1026_s19, %s1026_s19, %s1027_s20  }
  0x6a   :  { %s925_s25 = scalar_lea.hbm %s1243_s4, 1024 }
  0x6b   :  { %p926_p6 = scmp.ne.s32.totalorder %s1243_s4, %s925_s25  ;;  %p929_p7 = scmp.lt.u32.totalorder %s925_s25, %s1243_s4 }
  0x6d   :  { %p931_p8 = pnand %p929_p7, %p926_p6 }
  0x6f   :  { %934 = shalt.err (!%p931_p8)
}
  0x70   :  { %s935_s29 = scalar_lea.vmem %s70_s10, 1024  ;;  %p940_p10 = scmp.lt.s32.totalorder %s70_s10, %s70_s10 }
  0x71   :  { %p936_p9 = scmp.ne.s32.totalorder %s70_s10, %s935_s29  ;;  %p941_p11 = scmp.lt.s32.totalorder %s935_s29, %s935_s29 }
  0x73   :  { %p942_p12 = por %p941_p11, %p940_p10 }
  0x75   :  { %p943_p13 = pnand %p942_p12, %p936_p9 }
  0x77   :  { %946 = shalt.err (!%p943_p13)
}
  0x78   :  { %75 = dma.hbm_to_vmem [thread:$0]  %s1243_s4, 1024, %s70_s10, [#allocation9], %s1026_s19, %s1026_s19, %s1027_s20  }
  0x79   :  { %s1034_s30 = smov [#allocation13]   ;;  %s1035_s13 = smov [#allocation16]  }
  0x7a   :  { %s91_s11 = sshll.u32 %s1034_s30, 4  ;;  %s113_s1 = sshll.u32 %s1035_s13, 4  ;;  %s92_s11 = int_to_ptr.vmem [resolvable:$true] %s91_s11  ;;  %s114_s1 = int_to_ptr.vmem [resolvable:$true] %s113_s1 }
  0x7b   :  { %s947_s16 = scalar_lea.hbm %s1245_s6, 1024 }
  0x7c   :  { %p948_p0 = scmp.ne.s32.totalorder %s1245_s6, %s947_s16  ;;  %p951_p1 = scmp.lt.u32.totalorder %s947_s16, %s1245_s6 }
  0x7e   :  { %p953_p2 = pnand %p951_p1, %p948_p0 }
  0x80   :  { %956 = shalt.err (!%p953_p2)
}
  0x81   :  { %s957_s4 = scalar_lea.vmem %s92_s11, 1024  ;;  %p962_p4 = scmp.lt.s32.totalorder %s92_s11, %s92_s11 }
  0x82   :  { %p958_p3 = scmp.ne.s32.totalorder %s92_s11, %s957_s4  ;;  %p963_p5 = scmp.lt.s32.totalorder %s957_s4, %s957_s4 }
  0x84   :  { %p964_p6 = por %p963_p5, %p962_p4 }
  0x86   :  { %p965_p7 = pnand %p964_p6, %p958_p3 }
  0x88   :  { %968 = shalt.err (!%p965_p7)
}
  0x89   :  { %97 = dma.hbm_to_vmem [thread:$0]  %s1245_s6, 1024, %s92_s11, [#allocation12], %s1026_s19, %s1026_s19, %s1027_s20  }
  0x8a   :  { %s969_s22 = scalar_lea.hbm %s1247_s8, 512 }
  0x8b   :  { %p970_p8 = scmp.ne.s32.totalorder %s1247_s8, %s969_s22  ;;  %p973_p9 = scmp.lt.u32.totalorder %s969_s22, %s1247_s8 }
  0x8d   :  { %p975_p10 = pnand %p973_p9, %p970_p8 }
  0x8f   :  { %978 = shalt.err (!%p975_p10)
}
  0x90   :  { %s979_s3 = scalar_lea.vmem %s114_s1, 512  ;;  %p984_p12 = scmp.lt.s32.totalorder %s114_s1, %s114_s1 }
  0x91   :  { %p980_p11 = scmp.ne.s32.totalorder %s114_s1, %s979_s3  ;;  %p985_p13 = scmp.lt.s32.totalorder %s979_s3, %s979_s3 }
  0x93   :  { %p986_p0 = por %p985_p13, %p984_p12 }
  0x95   :  { %p987_p1 = pnand %p986_p0, %p980_p11 }
  0x97   :  { %990 = shalt.err (!%p987_p1)
}
  0x98   :  { %119 = dma.hbm_to_vmem [thread:$0]  %s1247_s8, 512, %s114_s1, [#allocation15], %s1026_s19, %s1026_s19, %s1027_s20  }
  0x99   :  { %1013 = dma.done.wait [#allocation3], 32  }
  0x9a   :  { %1014 = vsyncadd [#allocation3], 4294967264 }
  0x9b   :  { %1015 = dma.done.wait [#allocation6], 768  }
  0x9c   :  { %1016 = vsyncadd [#allocation6], 4294966528 }
  0x9d   :  { %1017 = dma.done.wait [#allocation9], 1040  }
  0x9e   :  { %1018 = vsyncadd [#allocation9], 4294966256 }
  0x9f   :  { %1019 = dma.done.wait [#allocation12], 1040  }
  0xa0   :  { %1020 = vsyncadd [#allocation12], 4294966256 }
  0xa1   :  { %1021 = dma.done.wait [#allocation15], 528  }
  0xa2   :  { %1022 = vsyncadd [#allocation15], 4294966768  ;;  %v1036_v0 = vmov 0.0|0.0   ;;  %vm1037_vm0 = vmmov 0   ;;  %v1038_v1 = vmov 0.0   ;;  %v235_v2 = vld [vmem:[#allocation10] sm:$0xff]  ;;  %v426_v43 = vlaneseq }
  0xa3   :  { %723 = vmatprep.subr.bf16.mxu0 %v1036_v0  ;;  %671 = vmatprep.mubr.msk.f32.mxu0 %vm1037_vm0, %v1038_v1  ;;  %v236_v3 = vld [vmem:[#allocation10 + $0x8] sm:$0xff]  ;;  %v150_v4 = vld [vmem:[#allocation7] sm:$0xff]  ;;  %v237_v7 = vld [vmem:[#allocation10 + $0x10] sm:$0xff]  ;;  %vm250_vm1 = vcmask 523264   ;;  %vm161_vm2 = vcmask 261120   ;;  %s1040_s8 = smov [#allocation17]  }
  0xa4   :  { %v729_v5 = vpack.c.bf16 %v236_v3, %v235_v2  ;;  %v151_v6 = vld [vmem:[#allocation7 + $0x8] sm:$0xff]  ;;  %v238_v8 = vld [vmem:[#allocation10 + $0x18] sm:$0xff]  ;;  %v152_v11 = vld [vmem:[#allocation7 + $0x10] sm:$0xff]  ;;  %v1039_v41 = vmov 1966171168   ;;  %v427_v45 = vshrl.u32 %v426_v43, 7 }
  0xa5   :  { %v724_v9 = vpack.c.bf16 %v151_v6, %v150_v4  ;;  %v733_v10 = vpack.c.bf16 %v238_v8, %v237_v7  ;;  %v153_v12 = vld [vmem:[#allocation7 + $0x18] sm:$0xff]  ;;  %v239_v13 = vld [vmem:[#allocation10 + $0x20] sm:$0xff]  ;;  %v240_v14 = vld [vmem:[#allocation10 + $0x28] sm:$0xff]  ;;  %v424_v42 = vunpack.c.l.s4 %v1039_v41  ;;  %s609_s19 = sshll.u32 %s1040_s8, 4  ;;  %vm598_vm3 = vcmask 1041409   ;;  %s610_s19 = int_to_ptr.vmem [resolvable:$true] %s609_s19 }
  0xa6   :  { %730 = vmatprep.subr.bf16.mxu1 %v729_v5  ;;  %v727_v15 = vpack.c.bf16 %v153_v12, %v152_v11  ;;  %v148_v16 = vld [vmem:[#allocation5] sm:$0xff]  ;;  %v737_v17 = vpack.c.bf16 %v240_v14, %v239_v13  ;;  %v242_v19 = vld [vmem:[#allocation10 + $0x38] sm:$0xff]  ;;  %v147_v20 = vld [vmem:[#allocation2] sm:$0x3]  ;;  %v447_v52 = vsub.s32 0, %v427_v45  ;;  %vm601_vm4 = vcmask 517120   ;;  %p996_p3 = scmp.lt.s32.totalorder %s610_s19, %s610_s19 }
  0xa7   :  { %725 = vmatpush3.bf16.msra.mxu0 %v724_v9  ;;  %732 = vmatpush3.bf16.msra.mxu1 %v729_v5  ;;  %v241_v18 = vld [vmem:[#allocation10 + $0x30] sm:$0xff]  ;;  %v457_v23 = vld [vmem:[#allocation16] sm:$0xff]  ;;  %v460_v27 = vld [vmem:[#allocation16 + $0x18] sm:$0xff]  ;;  %v425_v44 = vunpack.c.0.s8 %v424_v42  ;;  %s991_s20 = scalar_lea.vmem %s610_s19, 32 }
  0xa8   :  { %726 = vmatprep.subr.bf16.mxu0 %v1036_v0  ;;  %734 = vmatprep.subr.bf16.mxu1 %v733_v10  ;;  %v741_v21 = vpack.c.bf16 %v242_v19, %v241_v18  ;;  %v149_v22 = vld [vmem:[#allocation5 + $0x8] sm:$0xff]  ;;  %v458_v24 = vld [vmem:[#allocation16 + $0x8] sm:$0xff]  ;;  %v332_v29 = vld [vmem:[#allocation13] sm:$0xff]  ;;  %p992_p2 = scmp.ne.s32.totalorder %s610_s19, %s991_s20  ;;  %p997_p4 = scmp.lt.s32.totalorder %s991_s20, %s991_s20 }
  0xa9   :  { %690 = vmatprep.mubr.msk.f32.mxu1 %vm250_vm1, %v148_v16  ;;  %v761_v25 = vpack.c.bf16 %v458_v24, %v457_v23  ;;  %v459_v26 = vld [vmem:[#allocation16 + $0x10] sm:$0xff]  ;;  %v333_v30 = vld [vmem:[#allocation13 + $0x8] sm:$0xff]  ;;  %v336_v35 = vld [vmem:[#allocation13 + $0x20] sm:$0xff]  ;;  %v428_v47 = vsub.s32 %v425_v44, %v427_v45 }
  0xaa   :  { %v765_v28 = vpack.c.bf16 %v460_v27, %v459_v26  ;;  %v334_v31 = vld [vmem:[#allocation13 + $0x10] sm:$0xff]  ;;  %v745_v32 = vpack.c.bf16 %v333_v30, %v332_v29  ;;  %v335_v33 = vld [vmem:[#allocation13 + $0x18] sm:$0xff]  ;;  %v337_v36 = vld [vmem:[#allocation13 + $0x28] sm:$0xff]  ;;  %p998_p5 = por %p997_p4, %p996_p3 }
  0xab   :  { %728 = vmatpush3.bf16.msra.mxu0 %v727_v15  ;;  %736 = vmatpush3.bf16.msra.mxu1 %v733_v10  ;;  %v749_v34 = vpack.c.bf16 %v335_v33, %v334_v31  ;;  %v753_v37 = vpack.c.bf16 %v337_v36, %v336_v35  ;;  %v338_v38 = vld [vmem:[#allocation13 + $0x30] sm:$0xff]  ;;  %v339_v39 = vld [vmem:[#allocation13 + $0x38] sm:$0xff] }
  0xac   :  { %738 = vmatprep.subr.bf16.mxu1 %v737_v17  ;;  %746 = vmatprep.subr.bf16.mxu0 %v745_v32  ;;  %v757_v40 = vpack.c.bf16 %v339_v39, %v338_v38  ;;  %v622_v46 = vld [vmem:[#allocation8] ss:$0 sm:$0xff]  ;;  %v624_v55 = vld [vmem:[#allocation11] ss:$0 sm:$0xff]  ;;  %v627_v39 = vld [vmem:[#allocation14] ss:$0 sm:$0xff]  ;;  %p999_p6 = pnand %p998_p5, %p992_p2 }
  0xae   :  { %672 = vmatmul.mubr.msk.f32.vlgmr.msra.gmra.mrb[0].mxu0 %vm161_vm2, %v147_v20 }
  0xaf   :  { %740 = vmatpush3.bf16.msra.mxu1 %v737_v17  ;;  %709 = vmatprep.mubr.msk.f32.mxu0 %vm250_vm1, %v148_v16 }
  0xb0   :  { %742 = vmatprep.subr.bf16.mxu1 %v741_v21  ;;  %748 = vmatpush3.bf16.msra.mxu0 %v745_v32 }
  0xb1   :  { %750 = vmatprep.subr.bf16.mxu0 %v749_v34 }
  0xb3   :  { %744 = vmatpush3.bf16.msra.mxu1 %v741_v21 }
  0xb4   :  { %762 = vmatprep.subr.bf16.mxu1 %v761_v25  ;;  %752 = vmatpush3.bf16.msra.mxu0 %v749_v34 }
  0xb5   :  { %754 = vmatprep.subr.bf16.mxu0 %v753_v37 }
  0xb6   :  { %691 = vmatmul.mubr.msk.f32.vlgmr.msra.gmra.mrb[0].mxu1 %vm250_vm1, %v149_v22 }
  0xb7   :  { %764 = vmatpush3.bf16.msra.mxu1 %v761_v25 }
  0xb8   :  { %766 = vmatprep.subr.bf16.mxu1 %v765_v28  ;;  %756 = vmatpush3.bf16.msra.mxu0 %v753_v37 }
  0xb9   :  { %758 = vmatprep.subr.bf16.mxu0 %v757_v40 }
  0xbb   :  { %768 = vmatpush3.bf16.msra.mxu1 %v765_v28 }
  0xbc   :  { %760 = vmatpush3.bf16.msra.mxu0 %v757_v40 }
  0xbf   :  { %710 = vmatmul.mubr.msk.f32.vlgmr.msra.gmra.mrb[2].mxu0 %vm250_vm1, %v149_v22 }
 0x181   :  { %v231_v48 = vpop.f32.mrb[0].mxu0 }
 0x182   :  { %v232_v49 = vadd.f32 %v622_v46, %v231_v48  ;;  %v673_v50 = vpop.f32.mrb[1].mxu0 }
 0x184   :  { %v429_v51 = vrot.slane %v232_v49, %v428_v47 }
 0x186   :  { %v430_v53 = vcombine.high %v429_v51, %v429_v51  ;;  %v437_v54 = vrot.slane %v429_v51, %v428_v47 }
 0x188   :  { %v444_v56 = vrot.slane %v430_v53, %v428_v47  ;;  %v448_v58 = vrot.slane %v437_v54, %v447_v52 }
 0x189   :  { %v692_v57 = vpop.f32.mrb[0].mxu1 }
 0x18a   :  { %v329_v59 = vadd.f32 %v692_v57, %v624_v55  ;;  %v452_v60 = vrot.slane %v444_v56, %v447_v52  ;;  %v323_v61 = vpop.f32.mrb[1].mxu1 }
 0x18b   :  { %v324_v62 = vadd.f32 %v624_v55, %v323_v61 }
 0x18c   :  { %v456_v63 = vmul.f32 %v452_v60, %v329_v59 }
 0x18d   :  { %v455_v0 = vmul.f32 %v448_v58, %v324_v62 }
 0x18f   :  { %720 = vmatprep.mubr.msk.f32.mxu1 %vm161_vm2, %v455_v0 }
 0x190   :  { %721 = vmatmul.mubr.msk.f32.vlgmr.msra.gmra.mrb[2].mxu1 %vm161_vm2, %v456_v63 }
 0x192   :  { %v711_v1 = vpop.f32.mrb[2].mxu0 }
 0x193   :  { %v413_v2 = vpop.f32.mrb[3].mxu0  ;;  %v419_v40 = vadd.f32 %v711_v1, %v627_v39 }
 0x194   :  { %v414_v42 = vadd.f32 %v627_v39, %v413_v2 }
 0x263   :  { %v722_v3 = vpop.f32.mrb[2].mxu1 }
 0x264   :  { %v549_v4 = vsel %vm250_vm1, %v722_v3, -inf  ;;  %v533_v5 = vpop.f32.mrb[3].mxu1 }
 0x265   :  { %v550_v6 = vrot.slane %v549_v4, 4  ;;  %v542_v7 = vsel %vm250_vm1, %v533_v5, -inf }
 0x266   :  { %v543_v8 = vrot.slane %v542_v7, 4 }
 0x267   :  { %v551_v9 = vmax.f32 %v549_v4, %v550_v6 }
 0x268   :  { %v544_v10 = vmax.f32 %v542_v7, %v543_v8 }
 0x269   :  { %v552_v11 = vrot.slane %v551_v9, 2 }
 0x26a   :  { %v545_v12 = vrot.slane %v544_v10, 2 }
 0x26b   :  { %v553_v13 = vmax.f32 %v551_v9, %v552_v11 }
 0x26c   :  { %v546_v14 = vmax.f32 %v544_v10, %v545_v12 }
 0x26d   :  { %v554_v15 = vrot.slane %v553_v13, 1 }
 0x26e   :  { %v547_v16 = vrot.slane %v546_v14, 1 }
 0x26f   :  { %v555_v17 = vmax.f32 %v553_v13, %v554_v15 }
 0x270   :  { %v548_v18 = vmax.f32 %v546_v14, %v547_v16 }
 0x271   :  { %v557_v19 = vsub.f32 %v722_v3, %v555_v17 }
 0x272   :  { %v556_v20 = vsub.f32 %v533_v5, %v548_v18 }
 0x273   :  { %v560_v21 = vmul.f32 1.442695, %v557_v19 }
 0x274   :  { %v558_v22 = vmul.f32 1.442695, %v556_v20 }
 0x275   :  { %785 = vpow2.f32 %v560_v21 }
 0x276   :  { %787 = vpow2.f32 %v558_v22 }
 0x27f   :  { %v786_v23 = vpop.eup %785 }
 0x280   :  { %v788_v24 = vpop.eup %787  ;;  %v569_v25 = vsel %vm250_vm1, %v786_v23, 0.0 }
 0x281   :  { %v570_v26 = vrot.slane %v569_v25, 4  ;;  %v562_v27 = vsel %vm250_vm1, %v788_v24, 0.0 }
 0x282   :  { %v563_v28 = vrot.slane %v562_v27, 4 }
 0x283   :  { %v571_v29 = vadd.f32 %v570_v26, %v569_v25 }
 0x284   :  { %v564_v30 = vadd.f32 %v563_v28, %v562_v27 }
 0x285   :  { %v572_v31 = vrot.slane %v571_v29, 2 }
 0x286   :  { %v565_v32 = vrot.slane %v564_v30, 2 }
 0x287   :  { %v573_v33 = vadd.f32 %v572_v31, %v571_v29 }
 0x288   :  { %v566_v34 = vadd.f32 %v565_v32, %v564_v30 }
 0x289   :  { %v574_v35 = vrot.slane %v573_v33, 1 }
 0x28a   :  { %v567_v36 = vrot.slane %v566_v34, 1 }
 0x28b   :  { %v575_v37 = vadd.f32 %v574_v35, %v573_v33 }
 0x28c   :  { %v568_v38 = vadd.f32 %v567_v36, %v566_v34 }
 0x28d   :  { %789 = vrcp.f32 %v575_v37 }
 0x28e   :  { %791 = vrcp.f32 %v568_v38 }
 0x297   :  { %v790_v41 = vpop.eup %789 }
 0x298   :  { %v792_v43 = vpop.eup %791  ;;  %v579_v44 = vmul.f32 %v790_v41, %v786_v23 }
 0x299   :  { %v577_v45 = vmul.f32 %v792_v43, %v788_v24 }
 0x29a   :  { %v581_v46 = vmul.f32 %v579_v44, %v419_v40 }
 0x29b   :  { %v580_v47 = vmul.f32 %v577_v45, %v414_v42 }
 0x29c   :  { %v589_v48 = vsel %vm250_vm1, %v581_v46, 0.0 }
 0x29d   :  { %v590_v49 = vrot.slane %v589_v48, 4  ;;  %v582_v50 = vsel %vm250_vm1, %v580_v47, 0.0 }
 0x29e   :  { %v583_v51 = vrot.slane %v582_v50, 4 }
 0x29f   :  { %v591_v52 = vadd.f32 %v590_v49, %v589_v48 }
 0x2a0   :  { %v584_v53 = vadd.f32 %v583_v51, %v582_v50 }
 0x2a1   :  { %v592_v54 = vrot.slane %v591_v52, 2 }
 0x2a2   :  { %v585_v55 = vrot.slane %v584_v53, 2 }
 0x2a3   :  { %v593_v56 = vadd.f32 %v592_v54, %v591_v52 }
 0x2a4   :  { %v586_v57 = vadd.f32 %v585_v55, %v584_v53 }
 0x2a5   :  { %v594_v58 = vrot.slane %v593_v56, 1 }
 0x2a6   :  { %v587_v59 = vrot.slane %v586_v57, 1 }
 0x2a7   :  { %v595_v60 = vadd.f32 %v594_v58, %v593_v56 }
 0x2a8   :  { %v588_v61 = vadd.f32 %v587_v59, %v586_v57 }
 0x2aa   :  { %v599_v62 = vsel %vm598_vm3, %v595_v60, %v588_v61 }
 0x2ab   :  { %602 = vst.msk [vmem:[#allocation17] sm:$0x3] %vm601_vm4, %v599_v62 }
 0x2ac   :  { %1002 = shalt.err (!%p999_p6)
}
 0x2ad   :  { %s1003_s7 = scalar_lea.hbm %s1248_s9, 32 }
 0x2ae   :  { %p1004_p7 = scmp.ne.s32.totalorder %s1248_s9, %s1003_s7  ;;  %p1007_p8 = scmp.lt.u32.totalorder %s1003_s7, %s1248_s9 }
 0x2b0   :  { %p1009_p9 = pnand %p1007_p8, %p1004_p7 }
 0x2b2   :  { %1012 = shalt.err (!%p1009_p9)
}
 0x2b3   :  { %612 = dma.vmem_to_hbm [thread:$0]  %s610_s19, 32, %s1248_s9, [#allocation4]  }
 0x2b4   :  { %1023 = dma.done.wait [#allocation4], 32  }
 0x2b5   :  { %1024 = vsyncadd [#allocation4], 4294967264 }
 0x2b6   :  { %616 = vsyncpa [#allocation3], 1 }
 0x2b7   :  { %617 = vsyncpa [#allocation6], 1 }
 0x2b8   :  { %618 = vsyncpa [#allocation9], 1 }
 0x2b9   :  { %619 = vsyncpa [#allocation12], 1 }
 0x2ba   :  { %620 = vsyncpa [#allocation15], 1 }
 0x2bb   :  { %621 = vsyncpa [#allocation4], 1 }

</bundles_post_ra>
